<compile_context>
chip_gen: v6e
topology: v6e:2x2x1
jax: 0.10.0
libtpu: 0.0.40
codegen_flags: <defaults>
</compile_context>

<pallas_src>
import jax
import jax.numpy as jnp
from jax import lax
from jax.experimental import pallas as pl
from jax.experimental.pallas import tpu as pltpu

BN_EPS = 1e-5
LANE = 128
SUBLANE = 8


def _round_up(x, m):
    return (x + m - 1) // m * m


def _cdiv(a, b):
    return -(-a // b)


# ---------------------------------------------------------------------------
# Phase 1: Linear per row tile + per-group BN sum/sumsq accumulation.
# ---------------------------------------------------------------------------
def _make_linear_stats_kernel(n_valid_rows, n_padded_rows, row_tile, steps_per_group):
    needs_mask = n_padded_rows != n_valid_rows

    def kernel(x_ref, w_ref, y_ref, stats_ref):
        g = pl.program_id(0)
        i = pl.program_id(1)

        @pl.when(i == 0)
        def _init():
            # Stats output block is resident across the inner axis: zero per group.
            stats_ref[...] = jnp.zeros_like(stats_ref)

        # Linear WITHOUT bias: with BatchNorm immediately after, the bias cancels
        # exactly (mean absorbs it; shift = beta - mean*scale reproduces it).
        y = jnp.dot(x_ref[...], w_ref[...], preferred_element_type=jnp.float32)

        def _accumulate(vals):
            stats_ref[0:1, :] += jnp.sum(vals, axis=0, keepdims=True)
            stats_ref[1:2, :] += jnp.sum(vals * vals, axis=0, keepdims=True)

        if needs_mask:
            tile_start = (g * steps_per_group + i) * row_tile

            @pl.when(tile_start + row_tile > n_valid_rows)   # only tiles with padding
            def _masked():
                rows = tile_start + lax.broadcasted_iota(jnp.int32, y.shape, 0)
                _accumulate(jnp.where(rows < n_valid_rows, y, 0.0))

            @pl.when(tile_start + row_tile <= n_valid_rows)  # full tiles: no mask ops
            def _full():
                _accumulate(y)
        else:
            _accumulate(y)

        # Stream y out in the (possibly bf16) compute dtype; stats used the f32 value.
        y_ref[...] = y.astype(y_ref.dtype)

    return kernel


# ---------------------------------------------------------------------------
# Phase 2: combine group stats, finalize BN scale/shift, apply BN + ReLU.
# ---------------------------------------------------------------------------
def _make_bn_relu_kernel(n_valid_rows, eps):
    inv_n = 1.0 / float(n_valid_rows)

    def kernel(y_ref, stats_ref, par_ref, o_ref):
        tot = jnp.sum(stats_ref[...], axis=0)                 # (2, Dout_p) f32
        mean = tot[0:1, :] * inv_n
        var = jnp.maximum(tot[1:2, :] * inv_n - mean * mean, 0.0)  # guard tiny <0
        inv_std = lax.rsqrt(var + eps)                        # EUP slot
        scale = par_ref[0:1, :] * inv_std                     # gamma * rsqrt(var+eps)
        shift = par_ref[1:2, :] - mean * scale                # beta - mean*scale

        yv = y_ref[...].astype(jnp.float32)                   # f32 VPU math (v5e-safe)
        out = jnp.maximum(yv * scale + shift, 0.0)
        # Dropout(p=0.0) is the identity.
        # TODO(synk): for p > 0 in training mode, draw a Bernoulli mask via
        # pltpu.prng_seed / pltpu.stateful_bernoulli and scale by 1/(1-p).
        o_ref[...] = out.astype(o_ref.dtype)

    return kernel


# ---------------------------------------------------------------------------
# One-time parameter preparation (NOT per forward call).
# ---------------------------------------------------------------------------
def prepare_mlp_params(w, b, gamma, beta, *, compute_dtype=jnp.bfloat16):
    """Transpose Linear weight to [in_dim, out_dim], pad feature dims to 128.
    The Linear bias `b` is intentionally unused: it cancels exactly through the
    following BatchNorm, so the forward output is identical without it."""
    del b
    out_dim, in_dim = w.shape
    din_p = _round_up(in_dim, LANE)
    dout_p = _round_up(out_dim, LANE)

    w_t = jnp.pad(jnp.transpose(w),
                  ((0, din_p - in_dim), (0, dout_p - out_dim))).astype(compute_dtype)

    pad = (0, dout_p - out_dim)
    bn_params = jnp.stack([jnp.pad(gamma.astype(jnp.float32), pad),
                           jnp.pad(beta.astype(jnp.float32), pad)])   # (2, Dout_p) f32
    return w_t, bn_params, out_dim


# ---------------------------------------------------------------------------
# Forward pass.
# ---------------------------------------------------------------------------
def mlp_layer_forward(x, w_t, bn_params, out_dim, *,
                      max_row_tile=512,        # raise to ~1024 on v6e (128 MiB VMEM)
                      n_row_groups=2,          # 2 => both TCs busy on v7x
                      max_p2_row_tile=2048,
                      out_dtype=None):
    """x: [..., in_dim]. w_t/bn_params from prepare_mlp_params. Returns [..., out_dim]."""
    in_dim = x.shape[-1]
    din_p, dout_p = w_t.shape
    lead_shape = x.shape[:-1]
    if out_dtype is None:
        out_dtype = x.dtype

    x2d = x.reshape(-1, in_dim)                 # BatchNorm over flattened rows
    n_rows = x2d.shape[0]

    row_tile = _round_up(min(max_row_tile, _round_up(n_rows, SUBLANE)), SUBLANE)
    steps_total = _cdiv(n_rows, row_tile)
    n_groups = max(1, min(n_row_groups, steps_total))
    steps_per_group = _cdiv(steps_total, n_groups)
    n_rows_p = n_groups * steps_per_group * row_tile

    # Single wrapper-side cast+pad pass (fused by XLA under jit).
    xp = x2d
    if xp.dtype != w_t.dtype:
        xp = xp.astype(w_t.dtype)
    if n_rows_p != n_rows or din_p != in_dim:
        xp = jnp.pad(xp, ((0, n_rows_p - n_rows), (0, din_p - in_dim)))

    y_dtype = w_t.dtype                          # bf16 intermediate on the default path
    x_item = jnp.dtype(w_t.dtype).itemsize
    y_item = jnp.dtype(y_dtype).itemsize
    o_item = jnp.dtype(out_dtype).itemsize

    # ---------------- Phase 1 ----------------
    x_spec = pl.BlockSpec((row_tile, din_p), lambda g, i: (g * steps_per_group + i, 0))
    w_spec = pl.BlockSpec((din_p, dout_p), lambda g, i: (0, 0))        # VMEM-resident
    y_spec = pl.BlockSpec((row_tile, dout_p), lambda g, i: (g * steps_per_group + i, 0))
    stats_spec = pl.BlockSpec((None, 2, dout_p), lambda g, i: (g, 0, 0))  # per-group

    p1_bufs = (row_tile * din_p * x_item + din_p * dout_p * x_item
               + row_tile * dout_p * y_item + 2 * dout_p * 4)
    p1_vmem = int(min(128 << 20, max(32 << 20, 4 * p1_bufs)))

    cost1 = pl.CostEstimate(
        flops=2 * n_rows_p * din_p * dout_p,
        transcendentals=0,
        bytes_accessed=(n_rows_p * din_p * x_item + din_p * dout_p * x_item
                        + n_rows_p * dout_p * y_item + n_groups * 2 * dout_p * 4))

    y, stats = pl.pallas_call(
        _make_linear_stats_kernel(n_rows, n_rows_p, row_tile, steps_per_group),
        grid=(n_groups, steps_per_group),
        in_specs=[x_spec, w_spec],
        out_specs=(y_spec, stats_spec),
        out_shape=(jax.ShapeDtypeStruct((n_rows_p, dout_p), y_dtype),
                   jax.ShapeDtypeStruct((n_groups, 2, dout_p), jnp.float32)),
        compiler_params=pltpu.CompilerParams(
            dimension_semantics=("parallel", "arbitrary"),  # groups independent;
            vmem_limit_bytes=p1_vmem),                      # stats carried over i
        cost_estimate=cost1,
    )(xp, w_t)

    # ---------------- Phase 2 ----------------
    # Larger, lane-dense slabs decoupled from the phase-1 row tile.
    p2_tile = row_tile
    while p2_tile * 2 <= max_p2_row_tile and n_rows_p % (p2_tile * 2) == 0:
        p2_tile *= 2
    p2_grid = n_rows_p // p2_tile

    y2_spec = pl.BlockSpec((p2_tile, dout_p), lambda i: (i, 0))
    stats2_spec = pl.BlockSpec((n_groups, 2, dout_p), lambda i: (0, 0, 0))  # resident
    par_spec = pl.BlockSpec((2, dout_p), lambda i: (0, 0))                  # resident
    out_spec = pl.BlockSpec((p2_tile, dout_p), lambda i: (i, 0))

    aliases = {0: 0} if jnp.dtype(out_dtype) == jnp.dtype(y_dtype) else {}

    p2_bufs = (p2_tile * dout_p * (y_item + o_item)
               + n_groups * 2 * dout_p * 4 + 2 * dout_p * 4)
    p2_vmem = int(min(128 << 20, max(32 << 20, 4 * p2_bufs)))

    cost2 = pl.CostEstimate(
        flops=4 * n_rows_p * dout_p,
        transcendentals=dout_p * p2_grid,
        bytes_accessed=n_rows_p * dout_p * (y_item + o_item)
                       + n_groups * 2 * dout_p * 4 + 2 * dout_p * 4)

    out_p = pl.pallas_call(
        _make_bn_relu_kernel(n_rows, BN_EPS),
        grid=(p2_grid,),
        in_specs=[y2_spec, stats2_spec, par_spec],
        out_specs=out_spec,
        out_shape=jax.ShapeDtypeStruct((n_rows_p, dout_p), out_dtype),
        input_output_aliases=aliases,                       # in-place over y
        compiler_params=pltpu.CompilerParams(
            dimension_semantics=("parallel",),
            vmem_limit_bytes=p2_vmem),
        cost_estimate=cost2,
    )(y, stats, bn_params)

    out = out_p[:n_rows, :out_dim]   # no-op lane slice when out_dim % 128 == 0
    return out.reshape(*lead_shape, out_dim)


# ---------------------------------------------------------------------------
# Pure-JAX reference (mirrors the PyTorch module forward, bias included).
# ---------------------------------------------------------------------------
def reference_forward(x, w, b, gamma, beta, compute_dtype=jnp.float32):
    y = jnp.einsum("...i,oi->...o",
                   x.astype(compute_dtype), w.astype(compute_dtype),
                   preferred_element_type=jnp.float32) + b
    shape = y.shape
    y2 = y.reshape(-1, shape[-1])
    mean = jnp.mean(y2, axis=0, keepdims=True)
    var = jnp.mean((y2 - mean) ** 2, axis=0, keepdims=True)   # biased batch variance
    y2 = (y2 - mean) * lax.rsqrt(var + BN_EPS) * gamma + beta
    return jnp.maximum(y2.reshape(shape), 0.0)


if __name__ == "__main__":
    in_dim, out_dim = 32, 32
    batch, seq = 2, 8                       # BN over 16 flattened rows

    key = jax.random.PRNGKey(0)
    kx, kw, kb, kx2 = jax.random.split(key, 4)

    x = jax.random.normal(kx, (batch, seq, in_dim), dtype=jnp.float32)

    bound = 1.0 / (in_dim ** 0.5)           # nn.Linear default init range
    w = jax.random.uniform(kw, (out_dim, in_dim), jnp.float32, -bound, bound)
    b = jax.random.uniform(kb, (out_dim,), jnp.float32, -bound, bound)
    gamma = jnp.ones((out_dim,), jnp.float32)    # BatchNorm1d weight init
    beta = jnp.zeros((out_dim,), jnp.float32)    # BatchNorm1d bias init

    # --- exact-precision path (f32 feed, f32 y, aliased in-place phase 2) ----
    w_t32, bn_p32, odim = prepare_mlp_params(w, b, gamma, beta,
                                             compute_dtype=jnp.float32)
    fwd32 = jax.jit(lambda xx, ww, pp: mlp_layer_forward(xx, ww, pp, odim))
    out = jax.block_until_ready(fwd32(x, w_t32, bn_p32))
    ref = reference_forward(x, w, b, gamma, beta)
    assert out.shape == (batch, seq, out_dim)
    assert jnp.allclose(out, ref, atol=1e-5, rtol=1e-5)

    # --- default bf16 path: 280 rows, 64-row tiles, 2 row groups x 3 steps ---
    # Padded rows are masked out of the batch statistics.
    x2 = jax.random.normal(kx2, (4, 70, in_dim), dtype=jnp.float32)
    w_tbf, bn_pbf, odim = prepare_mlp_params(w, b, gamma, beta)   # bf16 default
    fwd_bf = jax.jit(lambda xx, ww, pp: mlp_layer_forward(
        xx, ww, pp, odim, max_row_tile=64, n_row_groups=2))
    out2 = jax.block_until_ready(fwd_bf(x2, w_tbf, bn_pbf))
    ref2 = reference_forward(x2, w, b, gamma, beta, compute_dtype=jnp.bfloat16)
    assert out2.shape == (4, 70, out_dim)
    assert jnp.allclose(out2, ref2, atol=2e-2, rtol=2e-2)

    print("KERNEL_OK")
</pallas_src>

<mosaic_0001>
module attributes {stable_mosaic.version = 11 : i64} {
  func.func @kernel(%arg0: i32, %arg1: i32, %arg2: memref<16x128xf32, #tpu.memory_space<vmem>>, %arg3: memref<128x128xf32, #tpu.memory_space<vmem>>, %arg4: memref<16x128xf32, #tpu.memory_space<vmem>>, %arg5: memref<1x2x128xf32, #tpu.memory_space<vmem>>) attributes {dimension_semantics = [#tpu.dimension_semantics<parallel>, #tpu.dimension_semantics<arbitrary>], iteration_bounds = array<i64: 1, 1>, scalar_prefetch = 0 : i64, scratch_operands = 0 : i64, tpu.core_type = #tpu.core_type<tc>, window_params = [{transform_indices = @transform_0, window_bounds = array<i64: 16, 128>}, {pipeline_mode = #tpu.pipeline_mode<synchronous>, transform_indices = @transform_1, window_bounds = array<i64: 128, 128>}, {transform_indices = @transform_2, window_bounds = array<i64: 16, 128>}, {transform_indices = @transform_3, window_bounds = array<i64: 1, 2, 128>}]} {
    %c0_i32 = arith.constant 0 : i32
    %0 = arith.cmpi eq, %arg1, %c0_i32 : i32
    %1 = arith.extui %0 : i1 to i32
    %c0_i32_0 = arith.constant 0 : i32
    %2 = arith.cmpi ne, %1, %c0_i32_0 : i32
    scf.if %2 {
      %cst_19 = arith.constant 0.000000e+00 : f32
      %24 = vector.broadcast %cst_19 : f32 to vector<2x128xf32>
      %c0_20 = arith.constant 0 : index
      %c0_21 = arith.constant 0 : index
      %c0_22 = arith.constant 0 : index
      %25 = vector.load %arg5[%c0_20, %c0_21, %c0_22] : memref<1x2x128xf32, #tpu.memory_space<vmem>>, vector<1x2x128xf32>
      %26 = vector.shape_cast %25 : vector<1x2x128xf32> to vector<2x128xf32>
      %27 = vector.shape_cast %24 : vector<2x128xf32> to vector<1x2x128xf32>
      tpu.vector_store %arg5[%c0_20, %c0_21, %c0_22], %27 {strides = array<i32>} : memref<1x2x128xf32, #tpu.memory_space<vmem>>, vector<1x2x128xf32>,
    } else {
    }
    %c0 = arith.constant 0 : index
    %c0_1 = arith.constant 0 : index
    %3 = vector.load %arg2[%c0, %c0_1] : memref<16x128xf32, #tpu.memory_space<vmem>>, vector<16x128xf32>
    %c0_2 = arith.constant 0 : index
    %c0_3 = arith.constant 0 : index
    %4 = vector.load %arg3[%c0_2, %c0_3] : memref<128x128xf32, #tpu.memory_space<vmem>>, vector<128x128xf32>
    %cst = arith.constant dense<0.000000e+00> : vector<16x128xf32>
    %5 = tpu.matmul %3, %4, %cst {dimension_numbers = #tpu.dot_dimension_numbers<[1], [0], [0], [1], [0, 0, 1, 1], [], []>} : vector<16x128xf32>, vector<128x128xf32>, vector<16x128xf32> -> vector<16x128xf32>
    %c0_4 = arith.constant 0 : index
    %c0_5 = arith.constant 0 : index
    %c0_6 = arith.constant 0 : index
    %6 = vector.load %arg5[%c0_4, %c0_5, %c0_6] : memref<1x2x128xf32, #tpu.memory_space<vmem>>, vector<1x1x128xf32>
    %7 = vector.shape_cast %6 : vector<1x1x128xf32> to vector<1x128xf32>
    %cst_7 = arith.constant dense<0.000000e+00> : vector<128xf32>
    %8 = vector.multi_reduction <add>, %5, %cst_7 [0] : vector<16x128xf32> to vector<128xf32>
    %9 = vector.shape_cast %8 : vector<128xf32> to vector<1x128xf32>
    %10 = arith.addf %7, %9 : vector<1x128xf32>
    %c0_8 = arith.constant 0 : index
    %c0_9 = arith.constant 0 : index
    %c0_10 = arith.constant 0 : index
    %11 = vector.load %arg5[%c0_8, %c0_9, %c0_10] : memref<1x2x128xf32, #tpu.memory_space<vmem>>, vector<1x1x128xf32>
    %12 = vector.shape_cast %11 : vector<1x1x128xf32> to vector<1x128xf32>
    %13 = vector.shape_cast %10 : vector<1x128xf32> to vector<1x1x128xf32>
    tpu.vector_store %arg5[%c0_8, %c0_9, %c0_10], %13 {strides = array<i32>} : memref<1x2x128xf32, #tpu.memory_space<vmem>>, vector<1x1x128xf32>,
    %c0_11 = arith.constant 0 : index
    %c1 = arith.constant 1 : index
    %c0_12 = arith.constant 0 : index
    %14 = vector.load %arg5[%c0_11, %c1, %c0_12] : memref<1x2x128xf32, #tpu.memory_space<vmem>>, vector<1x1x128xf32>
    %15 = vector.shape_cast %14 : vector<1x1x128xf32> to vector<1x128xf32>
    %16 = arith.mulf %5, %5 : vector<16x128xf32>
    %cst_13 = arith.constant dense<0.000000e+00> : vector<128xf32>
    %17 = vector.multi_reduction <add>, %16, %cst_13 [0] : vector<16x128xf32> to vector<128xf32>
    %18 = vector.shape_cast %17 : vector<128xf32> to vector<1x128xf32>
    %19 = arith.addf %15, %18 : vector<1x128xf32>
    %c0_14 = arith.constant 0 : index
    %c1_15 = arith.constant 1 : index
    %c0_16 = arith.constant 0 : index
    %20 = vector.load %arg5[%c0_14, %c1_15, %c0_16] : memref<1x2x128xf32, #tpu.memory_space<vmem>>, vector<1x1x128xf32>
    %21 = vector.shape_cast %20 : vector<1x1x128xf32> to vector<1x128xf32>
    %22 = vector.shape_cast %19 : vector<1x128xf32> to vector<1x1x128xf32>
    tpu.vector_store %arg5[%c0_14, %c1_15, %c0_16], %22 {strides = array<i32>} : memref<1x2x128xf32, #tpu.memory_space<vmem>>, vector<1x1x128xf32>,
    %c0_17 = arith.constant 0 : index
    %c0_18 = arith.constant 0 : index
    %23 = vector.load %arg4[%c0_17, %c0_18] : memref<16x128xf32, #tpu.memory_space<vmem>>, vector<16x128xf32>
    tpu.vector_store %arg4[%c0_17, %c0_18], %5 {strides = array<i32>} : memref<16x128xf32, #tpu.memory_space<vmem>>, vector<16x128xf32>,
    return
  }
  func.func @transform_0(%arg0: i32, %arg1: i32) -> (i32, i32) {
    %c1_i32 = arith.constant 1 : i32
    %0 = arith.muli %arg0, %c1_i32 : i32
    %1 = arith.addi %0, %arg1 : i32
    %c0_i32 = arith.constant 0 : i32
    %c0_i32_0 = arith.constant 0 : i32
    return %1, %c0_i32 : i32, i32
  }
  func.func @transform_1(%arg0: i32, %arg1: i32) -> (i32, i32) {
    %c0_i32 = arith.constant 0 : i32
    %c0_i32_0 = arith.constant 0 : i32
    %c0_i32_1 = arith.constant 0 : i32
    return %c0_i32, %c0_i32_0 : i32, i32
  }
  func.func @transform_2(%arg0: i32, %arg1: i32) -> (i32, i32) {
    %c1_i32 = arith.constant 1 : i32
    %0 = arith.muli %arg0, %c1_i32 : i32
    %1 = arith.addi %0, %arg1 : i32
    %c0_i32 = arith.constant 0 : i32
    %c0_i32_0 = arith.constant 0 : i32
    return %1, %c0_i32 : i32, i32
  }
  func.func @transform_3(%arg0: i32, %arg1: i32) -> (i32, i32, i32) {
    %c0_i32 = arith.constant 0 : i32
    %c0_i32_0 = arith.constant 0 : i32
    %c0_i32_1 = arith.constant 0 : i32
    return %arg0, %c0_i32, %c0_i32_0 : i32, i32, i32
  }
}

module attributes {stable_mosaic.version = 11 : i64} {
  func.func @kernel(%arg0: i32, %arg1: memref<16x128xf32, #tpu.memory_space<vmem>>, %arg2: memref<1x2x128xf32, #tpu.memory_space<vmem>>, %arg3: memref<2x128xf32, #tpu.memory_space<vmem>>, %arg4: memref<16x128xf32, #tpu.memory_space<vmem>>) attributes {dimension_semantics = [#tpu.dimension_semantics<parallel>], iteration_bounds = array<i64: 1>, scalar_prefetch = 0 : i64, scratch_operands = 0 : i64, tpu.core_type = #tpu.core_type<tc>, window_params = [{transform_indices = @transform_0, window_bounds = array<i64: 16, 128>}, {pipeline_mode = #tpu.pipeline_mode<synchronous>, transform_indices = @transform_1, window_bounds = array<i64: 1, 2, 128>}, {pipeline_mode = #tpu.pipeline_mode<synchronous>, transform_indices = @transform_2, window_bounds = array<i64: 2, 128>}, {transform_indices = @transform_3, window_bounds = array<i64: 16, 128>}]} {
    %c0 = arith.constant 0 : index
    %c0_0 = arith.constant 0 : index
    %c0_1 = arith.constant 0 : index
    %0 = vector.load %arg2[%c0, %c0_0, %c0_1] : memref<1x2x128xf32, #tpu.memory_space<vmem>>, vector<1x2x128xf32>
    %cst = arith.constant dense<0.000000e+00> : vector<2x128xf32>
    %1 = vector.multi_reduction <add>, %0, %cst [0] : vector<1x2x128xf32> to vector<2x128xf32>
    %2 = vector.extract_strided_slice %1 {offsets = [0, 0], sizes = [1, 128], strides = [1, 1]} : vector<2x128xf32> to vector<1x128xf32>
    %cst_2 = arith.constant 6.250000e-02 : f32
    %3 = vector.broadcast %cst_2 : f32 to vector<1x128xf32>
    %4 = arith.mulf %2, %3 : vector<1x128xf32>
    %5 = vector.extract_strided_slice %1 {offsets = [1, 0], sizes = [1, 128], strides = [1, 1]} : vector<2x128xf32> to vector<1x128xf32>
    %cst_3 = arith.constant 6.250000e-02 : f32
    %6 = vector.broadcast %cst_3 : f32 to vector<1x128xf32>
    %7 = arith.mulf %5, %6 : vector<1x128xf32>
    %8 = arith.mulf %4, %4 : vector<1x128xf32>
    %9 = arith.subf %7, %8 : vector<1x128xf32>
    %cst_4 = arith.constant 0.000000e+00 : f32
    %10 = vector.broadcast %cst_4 : f32 to vector<1x128xf32>
    %11 = arith.maximumf %9, %10 : vector<1x128xf32>
    %cst_5 = arith.constant 9.99999974E-6 : f32
    %12 = vector.broadcast %cst_5 : f32 to vector<1x128xf32>
    %13 = arith.addf %11, %12 : vector<1x128xf32>
    %14 = math.rsqrt %13 : vector<1x128xf32>
    %c0_6 = arith.constant 0 : index
    %c0_7 = arith.constant 0 : index
    %15 = vector.load %arg3[%c0_6, %c0_7] : memref<2x128xf32, #tpu.memory_space<vmem>>, vector<1x128xf32>
    %16 = arith.mulf %15, %14 : vector<1x128xf32>
    %c1 = arith.constant 1 : index
    %c0_8 = arith.constant 0 : index
    %17 = vector.load %arg3[%c1, %c0_8] : memref<2x128xf32, #tpu.memory_space<vmem>>, vector<1x128xf32>
    %18 = arith.mulf %4, %16 : vector<1x128xf32>
    %19 = arith.subf %17, %18 : vector<1x128xf32>
    %c0_9 = arith.constant 0 : index
    %c0_10 = arith.constant 0 : index
    %20 = vector.load %arg1[%c0_9, %c0_10] : memref<16x128xf32, #tpu.memory_space<vmem>>, vector<16x128xf32>
    %21 = vector.broadcast %16 : vector<1x128xf32> to vector<16x128xf32>
    %22 = arith.mulf %20, %21 : vector<16x128xf32>
    %23 = vector.broadcast %19 : vector<1x128xf32> to vector<16x128xf32>
    %24 = arith.addf %22, %23 : vector<16x128xf32>
    %cst_11 = arith.constant 0.000000e+00 : f32
    %25 = vector.broadcast %cst_11 : f32 to vector<16x128xf32>
    %26 = arith.maximumf %24, %25 : vector<16x128xf32>
    %c0_12 = arith.constant 0 : index
    %c0_13 = arith.constant 0 : index
    %27 = vector.load %arg4[%c0_12, %c0_13] : memref<16x128xf32, #tpu.memory_space<vmem>>, vector<16x128xf32>
    tpu.vector_store %arg4[%c0_12, %c0_13], %26 {strides = array<i32>} : memref<16x128xf32, #tpu.memory_space<vmem>>, vector<16x128xf32>,
    return
  }
  func.func @transform_0(%arg0: i32) -> (i32, i32) {
    %c0_i32 = arith.constant 0 : i32
    %c0_i32_0 = arith.constant 0 : i32
    return %arg0, %c0_i32 : i32, i32
  }
  func.func @transform_1(%arg0: i32) -> (i32, i32, i32) {
    %c0_i32 = arith.constant 0 : i32
    %c0_i32_0 = arith.constant 0 : i32
    %c0_i32_1 = arith.constant 0 : i32
    %c0_i32_2 = arith.constant 0 : i32
    return %c0_i32, %c0_i32_0, %c0_i32_1 : i32, i32, i32
  }
  func.func @transform_2(%arg0: i32) -> (i32, i32) {
    %c0_i32 = arith.constant 0 : i32
    %c0_i32_0 = arith.constant 0 : i32
    %c0_i32_1 = arith.constant 0 : i32
    return %c0_i32, %c0_i32_0 : i32, i32
  }
  func.func @transform_3(%arg0: i32) -> (i32, i32) {
    %c0_i32 = arith.constant 0 : i32
    %c0_i32_0 = arith.constant 0 : i32
    return %arg0, %c0_i32 : i32, i32
  }
}

</mosaic_0001>

<bundles_post_ra>
// kernel: _lambda_.3
= control target key start
LH: loop header
LB: loop body
LE: loop exit
PB: predicated region body
PF: predicated region fallthrough
CT: control target
= control target key end

     0   :  { %v35_v7 = vlaneseq  ;;  %s98_s1 = inlined_call_operand.vmem [shape: f32[1,2,128], index: 1, kind: input, shape index: {}]   ;;  %s99_s2 = inlined_call_operand.vmem [shape: f32[2,128], index: 2, kind: input, shape index: {}]   ;;  %s100_s0 = inlined_call_operand.vmem [shape: f32[16,128], index: 0, kind: input, shape index: {}, may-alias: {0,3}]   ;;  %s101_s3 = inlined_call_operand.vmem [shape: f32[16,128], index: 3, kind: output, shape index: {}, may-alias: {0,3}]  }
   0x1   :  { %v14_v0 = vld [vmem:[%s98_s1] sm:$0x3]  ;;  %v34_v16 = vld [vmem:[%s100_s0 + $0x8] sm:$0xff] }
   0x2   :  { %v16_v1 = vmul.f32 0.0625, %v14_v0  ;;  %v36_v8 = vshrl.u32 %v35_v7, 7  ;;  %v25_v10 = vld [vmem:[%s99_s2] sm:$0x1]  ;;  %v30_v14 = vld [vmem:[%s99_s2 + $0x1] sm:$0x1] }
   0x3   :  { %v33_v15 = vld [vmem:[%s100_s0] sm:$0xff] }
   0x4   :  { %v17_v2 = vmul.f32 %v16_v1, %v16_v1  ;;  %v37_v12 = vsub.s32 0, %v36_v8 }
   0x6   :  { %v19_v3 = vrot.slane %v17_v2, 7 }
   0x8   :  { %v21_v4 = vsub.f32 %v16_v1, %v19_v3 }
   0xa   :  { %v22_v5 = vmax.f32 %v21_v4, 0.0 }
   0xc   :  { %v23_v6 = vadd.f32 1e-05, %v22_v5 }
   0xe   :  { %55 = vrsqrt.f32 %v23_v6 }
  0x1b   :  { %v56_v9 = vpop.eup %55 }
  0x1c   :  { %v27_v11 = vrot.slane %v56_v9, 1 }
  0x1e   :  { %v29_v13 = vmul.f32 %v27_v11, %v25_v10 }
  0x20   :  { %v31_v17 = vmul.f32 %v29_v13, %v16_v1  ;;  %v38_v18 = vrot.slane %v29_v13, %v37_v12 }
  0x22   :  { %v32_v19 = vsub.f32 %v30_v14, %v31_v17  ;;  %v39_v20 = vmul.f32 %v38_v18, %v33_v15  ;;  %v40_v21 = vmul.f32 %v38_v18, %v34_v16 }
  0x24   :  { %v44_v22 = vrot.slane %v32_v19, %v37_v12 }
  0x26   :  { %v45_v23 = vadd.f32 %v44_v22, %v39_v20  ;;  %v46_v24 = vadd.f32 %v44_v22, %v40_v21 }
  0x28   :  { %v47_v25 = vmax.f32 %v45_v23, 0.0  ;;  %v48_v26 = vmax.f32 %v46_v24, 0.0 }
  0x2a   :  { %49 = vst [vmem:[%s101_s3] sm:$0xff] %v47_v25  ;;  %50 = vst [vmem:[%s101_s3 + $0x8] sm:$0xff] %v48_v26 }

// kernel: _lambda_.2
= control target key start
LH: loop header
LB: loop body
LE: loop exit
PB: predicated region body
PF: predicated region fallthrough
CT: control target
= control target key end

     0   :  { %9 = vsyncpa [#allocation3], 0  ;;  %s301_s12 = smov [#allocation2]   ;;  %s355_s0 = inlined_call_operand.vmem [shape: f32[16,128], index: 0, kind: input, shape index: {}]   ;;  %s356_s1 = inlined_call_operand.hbm [shape: f32[128,128], index: 1, kind: input, shape index: {}]   ;;  %s357_s2 = inlined_call_operand.vmem [shape: f32[16,128], index: 2, kind: output, shape index: {0}]   ;;  %s358_s3 = inlined_call_operand.vmem [shape: f32[1,2,128], index: 3, kind: output, shape index: {1}]  }
   0x1   :  { %s25_s13 = sshll.u32 %s301_s12, 4  ;;  %s26_s13 = int_to_ptr.vmem [resolvable:$true] %s25_s13 }
   0x2   :  { %s287_s14 = scalar_lea.vmem %s26_s13, 2048  ;;  %p292_p1 = scmp.lt.s32.totalorder %s26_s13, %s26_s13 }
   0x3   :  { %p288_p0 = scmp.ne.s32.totalorder %s26_s13, %s287_s14  ;;  %p293_p2 = scmp.lt.s32.totalorder %s287_s14, %s287_s14 }
   0x5   :  { %p294_p3 = por %p293_p2, %p292_p1 }
   0x7   :  { %p295_p4 = pnand %p294_p3, %p288_p0 }
   0x9   :  { %298 = shalt.err (!%p295_p4)
}
   0xa   :  { %s302_s15 = smov 128   ;;  %s303_s16 = smov 8  }
   0xb   :  { %31 = dma.hbm_to_vmem [thread:$0]  %s356_s1, 2048, %s26_s13, [#allocation3], %s302_s15, %s302_s15, %s303_s16  }
   0xc   :  { %299 = dma.done.wait [#allocation3], 2048  }
   0xd   :  { %300 = vsyncadd [#allocation3], 4294965248  ;;  %v85_v0 = vld [vmem:[#allocation2 + $0x78] sm:$0xff]  ;;  %v84_v1 = vld [vmem:[#allocation2 + $0x70] sm:$0xff]  ;;  %v304_v18 = vmov 0.0  }
   0xe   :  { %240 = vmatprep.subr.mxu0 %v85_v0  ;;  %v83_v2 = vld [vmem:[#allocation2 + $0x68] sm:$0xff]  ;;  %v82_v3 = vld [vmem:[#allocation2 + $0x60] sm:$0xff]  ;;  %v81_v5 = vld [vmem:[#allocation2 + $0x58] sm:$0xff]  ;;  %67 = vst [vmem:[%s358_s3] sm:$0x3] %v304_v18 }
   0xf   :  { %241 = vmatpush3.msra.mxu0 %v85_v0  ;;  %v68_v4 = vld [vmem:[%s355_s0] sm:$0xff]  ;;  %v80_v6 = vld [vmem:[#allocation2 + $0x50] sm:$0xff]  ;;  %v79_v7 = vld [vmem:[#allocation2 + $0x48] sm:$0xff] }
  0x10   :  { %242 = vmatprep.subr.mxu0 %v84_v1  ;;  %272 = vmatprep.mubr.f32.mxu0 %v68_v4  ;;  %v78_v8 = vld [vmem:[#allocation2 + $0x40] sm:$0xff]  ;;  %v77_v9 = vld [vmem:[#allocation2 + $0x38] sm:$0xff]  ;;  %v76_v10 = vld [vmem:[#allocation2 + $0x30] sm:$0xff] }
  0x11   :  { %243 = vmatpush3.msra.mxu0 %v84_v1  ;;  %v75_v11 = vld [vmem:[#allocation2 + $0x28] sm:$0xff]  ;;  %v74_v12 = vld [vmem:[#allocation2 + $0x20] sm:$0xff]  ;;  %v73_v13 = vld [vmem:[#allocation2 + $0x18] sm:$0xff] }
  0x12   :  { %244 = vmatprep.subr.mxu0 %v83_v2  ;;  %v72_v14 = vld [vmem:[#allocation2 + $0x10] sm:$0xff]  ;;  %v71_v15 = vld [vmem:[#allocation2 + $0x8] sm:$0xff]  ;;  %v70_v16 = vld [vmem:[#allocation2] sm:$0xff] }
  0x13   :  { %245 = vmatpush3.msra.mxu0 %v83_v2  ;;  %v69_v17 = vld [vmem:[%s355_s0 + $0x8] sm:$0xff] }
  0x14   :  { %246 = vmatprep.subr.mxu0 %v82_v3 }
  0x15   :  { %247 = vmatpush3.msra.mxu0 %v82_v3  ;;  %v161_v34 = vld [vmem:[%s358_s3] sm:$0x1]  ;;  %v171_v37 = vld [vmem:[%s358_s3 + $0x1] sm:$0x1] }
  0x16   :  { %248 = vmatprep.subr.mxu0 %v81_v5 }
  0x17   :  { %249 = vmatpush3.msra.mxu0 %v81_v5 }
  0x18   :  { %250 = vmatprep.subr.mxu0 %v80_v6 }
  0x19   :  { %251 = vmatpush3.msra.mxu0 %v80_v6 }
  0x1a   :  { %252 = vmatprep.subr.mxu0 %v79_v7 }
  0x1b   :  { %253 = vmatpush3.msra.mxu0 %v79_v7 }
  0x1c   :  { %254 = vmatprep.subr.mxu0 %v78_v8 }
  0x1d   :  { %255 = vmatpush3.msra.mxu0 %v78_v8 }
  0x1e   :  { %256 = vmatprep.subr.mxu0 %v77_v9 }
  0x1f   :  { %257 = vmatpush3.msra.mxu0 %v77_v9 }
  0x20   :  { %258 = vmatprep.subr.mxu0 %v76_v10 }
  0x21   :  { %259 = vmatpush3.msra.mxu0 %v76_v10 }
  0x22   :  { %260 = vmatprep.subr.mxu0 %v75_v11 }
  0x23   :  { %261 = vmatpush3.msra.mxu0 %v75_v11 }
  0x24   :  { %262 = vmatprep.subr.mxu0 %v74_v12 }
  0x25   :  { %263 = vmatpush3.msra.mxu0 %v74_v12 }
  0x26   :  { %264 = vmatprep.subr.mxu0 %v73_v13 }
  0x27   :  { %265 = vmatpush3.msra.mxu0 %v73_v13 }
  0x28   :  { %266 = vmatprep.subr.mxu0 %v72_v14 }
  0x29   :  { %267 = vmatpush3.msra.mxu0 %v72_v14 }
  0x2a   :  { %268 = vmatprep.subr.mxu0 %v71_v15 }
  0x2b   :  { %269 = vmatpush3.msra.mxu0 %v71_v15 }
  0x2c   :  { %270 = vmatprep.subr.mxu0 %v70_v16 }
  0x2d   :  { %271 = vmatpush3.msra.mxu0 %v70_v16 }
  0x2e   :  { %273 = vmatmul.mubr.f32.vlgmr.msra.gmra.mxu0 %v69_v17 }
  0xee   :  { %v274_v19 = vpop.f32.mrf.mxu0 }
  0xef   :  { %184 = vst [vmem:[%s357_s2 + $0x8] sm:$0xff] %v274_v19  ;;  %v173_v21 = vmul.f32 %v274_v19, %v274_v19 }
  0xf0   :  { %v152_v20 = vpop.f32.mrf.mxu0 }
  0xf1   :  { %v162_v22 = vadd.f32 %v274_v19, %v152_v20  ;;  %v172_v23 = vmul.f32 %v152_v20, %v152_v20  ;;  %183 = vst [vmem:[%s357_s2] sm:$0xff] %v152_v20 }
  0xf3   :  { %v163_v24 = vrot.slane %v162_v22, 4  ;;  %v174_v25 = vadd.f32 %v173_v21, %v172_v23 }
  0xf5   :  { %v164_v26 = vadd.f32 %v163_v24, %v162_v22  ;;  %v175_v27 = vrot.slane %v174_v25, 4 }
  0xf7   :  { %v165_v28 = vrot.slane %v164_v26, 2  ;;  %v176_v29 = vadd.f32 %v175_v27, %v174_v25 }
  0xf9   :  { %v166_v30 = vadd.f32 %v165_v28, %v164_v26  ;;  %v177_v31 = vrot.slane %v176_v29, 2 }
  0xfb   :  { %v167_v32 = vrot.slane %v166_v30, 1  ;;  %v178_v33 = vadd.f32 %v177_v31, %v176_v29 }
  0xfd   :  { %v168_v35 = vadd.f32 %v167_v32, %v166_v30  ;;  %v179_v36 = vrot.slane %v178_v33, 1 }
  0xff   :  { %v169_v38 = vadd.f32 %v168_v35, %v161_v34  ;;  %v180_v39 = vadd.f32 %v179_v36, %v178_v33 }
 0x101   :  { %170 = vst [vmem:[%s358_s3] sm:$0x1] %v169_v38  ;;  %v181_v40 = vadd.f32 %v180_v39, %v171_v37 }
 0x103   :  { %182 = vst [vmem:[%s358_s3 + $0x1] sm:$0x1] %v181_v40 }
 0x104   :  { %207 = vsyncpa [#allocation3], 1 }

</bundles_post_ra>
